<compile_context>
chip_gen: v7x
topology: tpu7x:2x2x1
jax: 0.10.0
libtpu: 0.0.40
codegen_flags: <defaults>
</compile_context>

<pallas_src>
import math

import jax
import jax.numpy as jnp
from jax.experimental import pallas as pl
from jax.experimental.pallas import tpu as pltpu


def _round_up(n, m):
    return ((n + m - 1) // m) * m


def dqn_kernel(xt_ref, w1_ref, b1_ref, w2_ref, b2_ref, w3_ref, b3_ref, o_ref):
    """One batch tile of the fused MLP, in transposed (features, batch) layout."""
    xt = xt_ref[...]                                                   # (in, TB)
    h1 = jnp.dot(w1_ref[...], xt, preferred_element_type=jnp.float32) + b1_ref[...]
    h1 = jnp.maximum(h1, 0.0)                                          # (10, TB)
    h2 = jnp.dot(w2_ref[...], h1, preferred_element_type=jnp.float32) + b2_ref[...]
    h2 = jnp.maximum(h2, 0.0)                                          # (10, TB)
    out = jnp.dot(w3_ref[...], h2, preferred_element_type=jnp.float32) + b3_ref[...]
    o_ref[...] = out.astype(o_ref.dtype)                               # (4, TB)


def deep_q_network_forward(x, params, *, tile_b=512):
    """Forward pass matching DeepQNetwork.forward.

    x: (B, input_size) float32.
    params (PyTorch layout):
      w1: (10, input_size)  b1: (10, 1)
      w2: (10, 10)          b2: (10, 1)
      w3: (4, 10)           b3: (4, 1)
    Returns (B, 4) float32.
    """
    w1, b1 = params["w1"], params["b1"]
    w2, b2 = params["w2"], params["b2"]
    w3, b3 = params["w3"], params["b3"]

    B, in_size = x.shape
    n_out = w3.shape[0]

    # Batch tile: a multiple of 128 so the lane axis is fully dense; capped so
    # the double-buffered working set stays well under VMEM even on v7x.
    TB = min(tile_b, _round_up(max(B, 1), 128))
    B_pad = _round_up(max(B, 1), TB)

    # Transposed, zero-padded input: (input_size, B_pad).
    xt = jnp.zeros((in_size, B_pad), x.dtype).at[:, :B].set(x.T)

    grid = (B_pad // TB,)

    # Weights/biases: full-array blocks, resident across all grid steps.
    resident = lambda a: pl.BlockSpec(a.shape, lambda i: (0, 0))

    flops = 2 * B_pad * (in_size * w1.shape[0]
                         + w2.shape[0] * w2.shape[1]
                         + w3.shape[0] * w3.shape[1])
    bytes_accessed = 4 * (B_pad * (in_size + n_out)
                          + sum(int(p.size) for p in (w1, b1, w2, b2, w3, b3)))

    out_t = pl.pallas_call(
        dqn_kernel,
        out_shape=jax.ShapeDtypeStruct((n_out, B_pad), jnp.float32),
        grid=grid,
        in_specs=[
            pl.BlockSpec((in_size, TB), lambda i: (0, i)),   # x streams per tile
            resident(w1), resident(b1),
            resident(w2), resident(b2),
            resident(w3), resident(b3),
        ],
        out_specs=pl.BlockSpec((n_out, TB), lambda i: (0, i)),
        compiler_params=pltpu.CompilerParams(
            dimension_semantics=("parallel",)),
        cost_estimate=pl.CostEstimate(
            flops=flops, transcendentals=0, bytes_accessed=bytes_accessed),
    )(xt, w1, b1, w2, b2, w3, b3)

    # Back to PyTorch's (batch, 4) layout; drop padding columns.
    return out_t[:, :B].T


def init_params(key, input_size, n_hidden=10, n_actions=4):
    """Deterministic init mimicking PyTorch's default Linear init
    (uniform(-1/sqrt(fan_in), 1/sqrt(fan_in))), stored PyTorch-style
    (out_features, in_features) / biases as column vectors (out_features, 1)."""
    keys = jax.random.split(key, 6)

    def lin(kw, kb, fan_in, fan_out):
        bound = 1.0 / math.sqrt(fan_in)
        w = jax.random.uniform(kw, (fan_out, fan_in), jnp.float32, -bound, bound)
        b = jax.random.uniform(kb, (fan_out, 1), jnp.float32, -bound, bound)
        return w, b

    w1, b1 = lin(keys[0], keys[1], input_size, n_hidden)
    w2, b2 = lin(keys[2], keys[3], n_hidden, n_hidden)
    w3, b3 = lin(keys[4], keys[5], n_hidden, n_actions)
    return {"w1": w1, "b1": b1, "w2": w2, "b2": b2, "w3": w3, "b3": b3}


def reference_forward(x, params):
    h1 = jnp.maximum(x @ params["w1"].T + params["b1"].T, 0.0)
    h2 = jnp.maximum(h1 @ params["w2"].T + params["b2"].T, 0.0)
    return h2 @ params["w3"].T + params["b3"].T


if __name__ == "__main__":
    key = jax.random.PRNGKey(0)
    k_param, k_x = jax.random.split(key)

    batch = 2
    input_size = 16  # e.g. a flattened game-state vector

    params = init_params(k_param, input_size)
    x = jax.random.normal(k_x, (batch, input_size), jnp.float32)

    out = deep_q_network_forward(x, params)
    out = jax.block_until_ready(out)

    ref = reference_forward(x, params)
    assert out.shape == (batch, 4)
    assert jnp.allclose(out, ref, atol=1e-5, rtol=1e-5), "mismatch vs reference"

    print("KERNEL_OK")
</pallas_src>

<mosaic_0001>
module attributes {stable_mosaic.version = 11 : i64} {
  func.func @dqn_kernel(%arg0: i32, %arg1: memref<16x128xf32, #tpu.memory_space<vmem>>, %arg2: memref<10x16xf32, #tpu.memory_space<vmem>>, %arg3: memref<10x1xf32, #tpu.memory_space<vmem>>, %arg4: memref<10x10xf32, #tpu.memory_space<vmem>>, %arg5: memref<10x1xf32, #tpu.memory_space<vmem>>, %arg6: memref<4x10xf32, #tpu.memory_space<vmem>>, %arg7: memref<4x1xf32, #tpu.memory_space<vmem>>, %arg8: memref<4x128xf32, #tpu.memory_space<vmem>>) attributes {dimension_semantics = [#tpu.dimension_semantics<parallel>], iteration_bounds = array<i64: 1>, scalar_prefetch = 0 : i64, scratch_operands = 0 : i64, tpu.core_type = #tpu.core_type<tc>, window_params = [{transform_indices = @transform_0, window_bounds = array<i64: 16, 128>}, {pipeline_mode = #tpu.pipeline_mode<synchronous>, transform_indices = @transform_1, window_bounds = array<i64: 10, 16>}, {pipeline_mode = #tpu.pipeline_mode<synchronous>, transform_indices = @transform_2, window_bounds = array<i64: 10, 1>}, {pipeline_mode = #tpu.pipeline_mode<synchronous>, transform_indices = @transform_3, window_bounds = array<i64: 10, 10>}, {pipeline_mode = #tpu.pipeline_mode<synchronous>, transform_indices = @transform_4, window_bounds = array<i64: 10, 1>}, {pipeline_mode = #tpu.pipeline_mode<synchronous>, transform_indices = @transform_5, window_bounds = array<i64: 4, 10>}, {pipeline_mode = #tpu.pipeline_mode<synchronous>, transform_indices = @transform_6, window_bounds = array<i64: 4, 1>}, {transform_indices = @transform_7, window_bounds = array<i64: 4, 128>}]} {
    %c0 = arith.constant 0 : index
    %c0_0 = arith.constant 0 : index
    %0 = vector.load %arg1[%c0, %c0_0] : memref<16x128xf32, #tpu.memory_space<vmem>>, vector<16x128xf32>
    %c0_1 = arith.constant 0 : index
    %c0_2 = arith.constant 0 : index
    %1 = vector.load %arg2[%c0_1, %c0_2] : memref<10x16xf32, #tpu.memory_space<vmem>>, vector<10x16xf32>
    %cst = arith.constant dense<0.000000e+00> : vector<10x128xf32>
    %2 = tpu.matmul %1, %0, %cst {dimension_numbers = #tpu.dot_dimension_numbers<[1], [0], [0], [1], [0, 0, 1, 1], [], []>} : vector<10x16xf32>, vector<16x128xf32>, vector<10x128xf32> -> vector<10x128xf32>
    %c0_3 = arith.constant 0 : index
    %c0_4 = arith.constant 0 : index
    %3 = vector.load %arg3[%c0_3, %c0_4] : memref<10x1xf32, #tpu.memory_space<vmem>>, vector<10x1xf32>
    %4 = vector.broadcast %3 : vector<10x1xf32> to vector<10x128xf32>
    %5 = arith.addf %2, %4 : vector<10x128xf32>
    %cst_5 = arith.constant 0.000000e+00 : f32
    %6 = vector.broadcast %cst_5 : f32 to vector<10x128xf32>
    %7 = arith.maximumf %5, %6 : vector<10x128xf32>
    %c0_6 = arith.constant 0 : index
    %c0_7 = arith.constant 0 : index
    %8 = vector.load %arg4[%c0_6, %c0_7] : memref<10x10xf32, #tpu.memory_space<vmem>>, vector<10x10xf32>
    %cst_8 = arith.constant dense<0.000000e+00> : vector<10x128xf32>
    %9 = tpu.matmul %8, %7, %cst_8 {dimension_numbers = #tpu.dot_dimension_numbers<[1], [0], [0], [1], [0, 0, 1, 1], [], []>} : vector<10x10xf32>, vector<10x128xf32>, vector<10x128xf32> -> vector<10x128xf32>
    %c0_9 = arith.constant 0 : index
    %c0_10 = arith.constant 0 : index
    %10 = vector.load %arg5[%c0_9, %c0_10] : memref<10x1xf32, #tpu.memory_space<vmem>>, vector<10x1xf32>
    %11 = vector.broadcast %10 : vector<10x1xf32> to vector<10x128xf32>
    %12 = arith.addf %9, %11 : vector<10x128xf32>
    %cst_11 = arith.constant 0.000000e+00 : f32
    %13 = vector.broadcast %cst_11 : f32 to vector<10x128xf32>
    %14 = arith.maximumf %12, %13 : vector<10x128xf32>
    %c0_12 = arith.constant 0 : index
    %c0_13 = arith.constant 0 : index
    %15 = vector.load %arg6[%c0_12, %c0_13] : memref<4x10xf32, #tpu.memory_space<vmem>>, vector<4x10xf32>
    %cst_14 = arith.constant dense<0.000000e+00> : vector<4x128xf32>
    %16 = tpu.matmul %15, %14, %cst_14 {dimension_numbers = #tpu.dot_dimension_numbers<[1], [0], [0], [1], [0, 0, 1, 1], [], []>} : vector<4x10xf32>, vector<10x128xf32>, vector<4x128xf32> -> vector<4x128xf32>
    %c0_15 = arith.constant 0 : index
    %c0_16 = arith.constant 0 : index
    %17 = vector.load %arg7[%c0_15, %c0_16] : memref<4x1xf32, #tpu.memory_space<vmem>>, vector<4x1xf32>
    %18 = vector.broadcast %17 : vector<4x1xf32> to vector<4x128xf32>
    %19 = arith.addf %16, %18 : vector<4x128xf32>
    %c0_17 = arith.constant 0 : index
    %c0_18 = arith.constant 0 : index
    %20 = vector.load %arg8[%c0_17, %c0_18] : memref<4x128xf32, #tpu.memory_space<vmem>>, vector<4x128xf32>
    tpu.vector_store %arg8[%c0_17, %c0_18], %19 {strides = array<i32>} : memref<4x128xf32, #tpu.memory_space<vmem>>, vector<4x128xf32>,
    return
  }
  func.func @transform_0(%arg0: i32) -> (i32, i32) {
    %c0_i32 = arith.constant 0 : i32
    %c0_i32_0 = arith.constant 0 : i32
    return %c0_i32, %arg0 : i32, i32
  }
  func.func @transform_1(%arg0: i32) -> (i32, i32) {
    %c0_i32 = arith.constant 0 : i32
    %c0_i32_0 = arith.constant 0 : i32
    %c0_i32_1 = arith.constant 0 : i32
    return %c0_i32, %c0_i32_0 : i32, i32
  }
  func.func @transform_2(%arg0: i32) -> (i32, i32) {
    %c0_i32 = arith.constant 0 : i32
    %c0_i32_0 = arith.constant 0 : i32
    %c0_i32_1 = arith.constant 0 : i32
    return %c0_i32, %c0_i32_0 : i32, i32
  }
  func.func @transform_3(%arg0: i32) -> (i32, i32) {
    %c0_i32 = arith.constant 0 : i32
    %c0_i32_0 = arith.constant 0 : i32
    %c0_i32_1 = arith.constant 0 : i32
    return %c0_i32, %c0_i32_0 : i32, i32
  }
  func.func @transform_4(%arg0: i32) -> (i32, i32) {
    %c0_i32 = arith.constant 0 : i32
    %c0_i32_0 = arith.constant 0 : i32
    %c0_i32_1 = arith.constant 0 : i32
    return %c0_i32, %c0_i32_0 : i32, i32
  }
  func.func @transform_5(%arg0: i32) -> (i32, i32) {
    %c0_i32 = arith.constant 0 : i32
    %c0_i32_0 = arith.constant 0 : i32
    %c0_i32_1 = arith.constant 0 : i32
    return %c0_i32, %c0_i32_0 : i32, i32
  }
  func.func @transform_6(%arg0: i32) -> (i32, i32) {
    %c0_i32 = arith.constant 0 : i32
    %c0_i32_0 = arith.constant 0 : i32
    %c0_i32_1 = arith.constant 0 : i32
    return %c0_i32, %c0_i32_0 : i32, i32
  }
  func.func @transform_7(%arg0: i32) -> (i32, i32) {
    %c0_i32 = arith.constant 0 : i32
    %c0_i32_0 = arith.constant 0 : i32
    return %c0_i32, %arg0 : i32, i32
  }
}

</mosaic_0001>

<bundles_post_ra>
// kernel: tpu_custom_call.1
= control target key start
LH: loop header
LB: loop body
LE: loop exit
PB: predicated region body
PF: predicated region fallthrough
CT: control target
= control target key end

     0   :  { %vm43_vm0 = vcmask 130048   ;;  %v412_v4 = vmov 0   ;;  %s519_s0 = inlined_call_operand.vmem [shape: f32[16,128], index: 0, kind: input, shape index: {}]   ;;  %s520_s1 = inlined_call_operand.vmem [shape: f32[10,16], index: 1, kind: input, shape index: {}]   ;;  %s521_s2 = inlined_call_operand.vmem [shape: f32[10,1], index: 2, kind: input, shape index: {}]   ;;  %s522_s3 = inlined_call_operand.vmem [shape: f32[10,10], index: 3, kind: input, shape index: {}]   ;;  %s523_s4 = inlined_call_operand.vmem [shape: f32[10,1], index: 4, kind: input, shape index: {}]   ;;  %s524_s5 = inlined_call_operand.vmem [shape: f32[4,10], index: 5, kind: input, shape index: {}]   ;;  %s525_s6 = inlined_call_operand.vmem [shape: f32[4,1], index: 6, kind: input, shape index: {}]   ;;  %s526_s7 = inlined_call_operand.hbm [shape: f32[4,128], index: 7, kind: output, shape index: {}]  }
   0x1   :  { %v27_v0 = vld [vmem:[%s519_s0] sm:$0xff]  ;;  %v28_v1 = vld [vmem:[%s519_s0 + $0x8] sm:$0xff]  ;;  %386 = vset.pattern.permute.xlu0 %v412_v4  ;;  %387 = vset.pattern.permute.xlu1 %v412_v4 }
   0x2   :  { %v29_v2 = vld [vmem:[%s520_s1] sm:$0xff]  ;;  %v366_v3 = vpack.c.bf16 %v28_v1, %v27_v0 }
   0x3   :  { %349 = vmatprep.mubr.msk.f32.mxu0 %vm43_vm0, %v29_v2  ;;  %v31_v5 = vld [vmem:[%s521_s2] sm:$0xff] }
   0x4   :  { %35 = vperm.xlu0 %386, %v31_v5  }
   0x5   :  { %12 = vsyncpa [#allocation3], 0  ;;  %367 = vmatprep.subr.bf16.mxu0 %v366_v3  ;;  %v32_v6 = vld [vmem:[%s521_s2 + $0x8] sm:$0x3]  ;;  %v230_v8 = vld [vmem:[%s525_s6] sm:$0xf] }
   0x6   :  { %369 = vmatpush3.bf16.msra.mxu0 %v366_v3  ;;  %v30_v7 = vld [vmem:[%s520_s1 + $0x8] sm:$0x3]  ;;  %v127_v9 = vld [vmem:[%s522_s3] sm:$0xff]  ;;  %vm141_vm1 = vcmask 80896   ;;  %vm148_vm2 = vcmask 1041408   ;;  %vm413_vm3 = vmmov 1  }
   0x7   :  { %356 = vmatprep.mubr.msk.f32.mxu1 %vm141_vm1, %v127_v9  ;;  %v129_v10 = vld [vmem:[%s523_s4] sm:$0xff]  ;;  %v130_v11 = vld [vmem:[%s523_s4 + $0x8] sm:$0x3]  ;;  %vm489_vm4 = vmpackc.low %vm148_vm2, %vm413_vm3  ;;  %v414_v23 = vmov 0.0|0.0   ;;  %vm415_vm5 = vmmov 0   ;;  %v416_v24 = vmov 0.0  }
   0x8   :  { %40 = vperm.xlu0 %386, %v32_v6   ;;  %133 = vperm.xlu1 %387, %v129_v10   ;;  %v128_v22 = vld [vmem:[%s522_s3 + $0x8] sm:$0x3]  ;;  %v229_v34 = vld [vmem:[%s524_s5] sm:$0xf]  ;;  %s417_s19 = smov [#allocation2]  }
   0x9   :  { %350 = vmatmul.mubr.msk.f32.vlgmr.msra.gmra.mrb[0].mxu0 %vm43_vm0, %v30_v7  ;;  %376 = vmatprep.subr.bf16.mxu0 %v414_v23  ;;  %s319_s20 = sshll.u32 %s417_s19, 4  ;;  %s320_s20 = int_to_ptr.vmem [resolvable:$true] %s319_s20 }
   0xa   :  { %363 = vmatprep.mubr.msk.f32.mxu0 %vm415_vm5, %v416_v24  ;;  %s388_s21 = scalar_lea.vmem %s320_s20, 64  ;;  %p393_p1 = scmp.lt.s32.totalorder %s320_s20, %s320_s20 }
   0xb   :  { %p389_p0 = scmp.ne.s32.totalorder %s320_s20, %s388_s21  ;;  %p394_p2 = scmp.lt.s32.totalorder %s388_s21, %s388_s21 }
   0xc   :  { %233 = vperm.xlu0 %386, %v230_v8   ;;  %138 = vperm.xlu1 %387, %v130_v11  }
   0xd   :  { %p395_p3 = por %p394_p2, %p393_p1 }
   0xf   :  { %p396_p4 = pnand %p395_p3, %p389_p0 }
  0x83   :  { %v36_v12 = vpop.permute.xlu0 %35 }
  0x87   :  { %v41_v13 = vpop.permute.xlu0 %40  ;;  %v134_v25 = vpop.permute.xlu1 %133 }
  0x8b   :  { %v139_v26 = vpop.permute.xlu1 %138  ;;  %v234_v35 = vpop.permute.xlu0 %233 }
  0xdc   :  { %v351_v14 = vpop.f32.mrb[0].mxu0 }
  0xdd   :  { %v122_v15 = vadd.f32 %v351_v14, %v41_v13  ;;  %v116_v16 = vpop.f32.mrb[1].mxu0 }
  0xde   :  { %v117_v17 = vadd.f32 %v116_v16, %v36_v12 }
  0xdf   :  { %v126_v18 = vmax.f32 %v122_v15, 0.0 }
  0xe0   :  { %v125_v19 = vmax.f32 %v117_v17, 0.0 }
  0xe2   :  { %v370_v21 = vpack.c.bf16 %v126_v18, %v125_v19 }
  0xe4   :  { %372 = vmatprep.subr.msk.bf16.mxu1 %vm489_vm4, %v370_v21 }
  0xe5   :  { %375 = vmatpush3.bf16.msk.msra.mxu1 %vm489_vm4, %v370_v21 }
  0xe8   :  { %357 = vmatmul.mubr.msk.f32.vlgmr.msra.gmra.mrb[0].mxu1 %vm141_vm1, %v128_v22 }
 0x1bb   :  { %v358_v27 = vpop.f32.mrb[0].mxu1 }
 0x1bc   :  { %v224_v28 = vadd.f32 %v358_v27, %v139_v26  ;;  %v218_v29 = vpop.f32.mrb[1].mxu1 }
 0x1bd   :  { %v219_v30 = vadd.f32 %v218_v29, %v134_v25 }
 0x1be   :  { %v228_v31 = vmax.f32 %v224_v28, 0.0 }
 0x1bf   :  { %v227_v32 = vmax.f32 %v219_v30, 0.0 }
 0x1c1   :  { %v377_v33 = vpack.c.bf16 %v228_v31, %v227_v32 }
 0x1c3   :  { %379 = vmatpush3.bf16.msk.msra.mxu0 %vm489_vm4, %v377_v33 }
 0x1c6   :  { %364 = vmatmul.mubr.msk.f32.vlgmr.msra.gmra.mrb[2].mxu0 %vm141_vm1, %v229_v34 }
 0x299   :  { %v308_v36 = vpop.f32.mrb[2].mxu0 }
 0x29a   :  { %v309_v37 = vadd.f32 %v308_v36, %v234_v35  ;;  %v365_v38 = vpop.f32.mrb[3].mxu0 }
 0x29c   :  { %312 = vst [vmem:[#allocation2] sm:$0xf] %v309_v37 }
 0x29d   :  { %399 = shalt.err (!%p396_p4)
}
 0x29e   :  { %s400_s5 = scalar_lea.hbm %s526_s7, 64 }
 0x29f   :  { %p401_p5 = scmp.ne.s32.totalorder %s526_s7, %s400_s5  ;;  %p404_p6 = scmp.lt.u32.totalorder %s400_s5, %s526_s7 }
 0x2a1   :  { %p406_p7 = pnand %p404_p6, %p401_p5 }
 0x2a3   :  { %409 = shalt.err (!%p406_p7)
}
 0x2a4   :  { %322 = dma.vmem_to_hbm [thread:$0]  %s320_s20, 64, %s526_s7, [#allocation3]  }
 0x2a5   :  { %410 = dma.done.wait [#allocation3], 64  }
 0x2a6   :  { %411 = vsyncadd [#allocation3], 4294967232 }
 0x2a7   :  { %326 = vsyncpa [#allocation3], 1 }

</bundles_post_ra>
